<compile_context>
chip_gen: v6e
topology: v6e:2x2x1
jax: 0.10.0
libtpu: 0.0.40
codegen_flags: <defaults>
</compile_context>

<pallas_src>
import jax
import jax.numpy as jnp
from jax.experimental import pallas as pl
from jax.experimental.pallas import tpu as pltpu


# --------------------------------------------------------------------------- #
# Kernel body: one (1, H, W, Ct) NHWC tile -> (1, H-1, W-1, Ct) tile.
# --------------------------------------------------------------------------- #
def _block_type1_kernel(x_ref, o_ref):
    x = x_ref[...]                                   # (1, H, W, Ct)
    # conv1/conv2/conv3 are ReLUs (idempotent -> apply once).
    x = jnp.maximum(x, jnp.zeros((), x.dtype))
    # MaxPool2d(kernel_size=2, stride=1), separable: first W, then H.
    m = jnp.maximum(x[:, :, :-1, :], x[:, :, 1:, :])     # shift along W (sublane)
    o_ref[...] = jnp.maximum(m[:, :-1, :, :], m[:, 1:, :, :])  # shift along H


# --------------------------------------------------------------------------- #
# Tiling helpers
# --------------------------------------------------------------------------- #
def _choose_channel_tile(C, H, W, itemsize, budget_bytes):
    """Channel tile Ct: divides C, keeps the lane dim either a multiple of 128
    or the full channel count, and keeps per-step (in+out) VMEM footprint under
    `budget_bytes` when possible."""
    per_ch = (H * W + (H - 1) * (W - 1)) * itemsize
    if C % 128 == 0:
        cands = [ct for ct in range(C, 127, -128) if C % ct == 0]
        for ct in cands:
            if ct * per_ch <= budget_bytes:
                return ct
        return cands[-1]  # smallest legal (128); may exceed budget for huge H*W
    # Lane axis must equal the full channel dim (the "full array dim" escape).
    return C


# TODO(synk): for very large spatial extents with small, non-128-multiple C
# (e.g. VGG's first 64x224x224 stage on v7x's 64 MiB VMEM) an H-tiling with a
# 1-row halo would be needed to shrink blocks further; not implemented here.
def block_type1_forward(x, *, force_pallas=False,
                        per_step_budget_bytes=11 * 1024 * 1024,
                        small_input_bytes=1 << 20):
    """x: (N, C, H, W) NCHW float array -> (N, C, H-1, W-1)."""
    N, C, H, W = x.shape
    itemsize = jnp.dtype(x.dtype).itemsize

    # Small-input fast path: launch overhead would dominate; let XLA fuse it.
    if (not force_pallas) and (x.size * itemsize < small_input_bytes):
        return _reference(x)

    # Lane-dense layout: NCHW -> NHWC (channels on the 128-lane axis).
    x_nhwc = jnp.transpose(x, (0, 2, 3, 1))          # (N, H, W, C)

    Ct = _choose_channel_tile(C, H, W, itemsize, per_step_budget_bytes)
    grid = (N, C // Ct)

    in_block_bytes = H * W * Ct * itemsize
    out_block_bytes = (H - 1) * (W - 1) * Ct * itemsize
    need = 2 * (in_block_bytes + out_block_bytes) + (2 << 20)  # double-buffered
    vmem_limit = None
    if need > (16 << 20):                 # above the smallest (v5e) default
        vmem_limit = min(need, 48 << 20)  # stay under v7x's 64 MiB physical

    out_nhwc = pl.pallas_call(
        _block_type1_kernel,
        out_shape=jax.ShapeDtypeStruct((N, H - 1, W - 1, C), x.dtype),
        grid=grid,
        in_specs=[pl.BlockSpec((1, H, W, Ct), lambda n, c: (n, 0, 0, c))],
        out_specs=pl.BlockSpec((1, H - 1, W - 1, Ct), lambda n, c: (n, 0, 0, c)),
        compiler_params=pltpu.CompilerParams(
            # Both axes independent -> shard across the 2 TCs on v7x; no-op on
            # single-TC v5e/v6e.
            dimension_semantics=("parallel", "parallel"),
            vmem_limit_bytes=vmem_limit,
        ),
    )(x_nhwc)

    # NHWC -> NCHW to match the PyTorch module's layout.
    return jnp.transpose(out_nhwc, (0, 3, 1, 2))


# --------------------------------------------------------------------------- #
# Parity with __init__ (weights are registered but unused by forward()).
# --------------------------------------------------------------------------- #
def init_params(key, in_ch):
    ks = jax.random.split(key, 6)
    params = {}
    for i in range(3):
        params[f"conv{i+1}_w"] = (
            jax.random.normal(ks[2 * i], (in_ch, in_ch, 3, 3), jnp.float32) * 0.05
        )
        params[f"conv{i+1}_b"] = (
            jax.random.normal(ks[2 * i + 1], (in_ch,), jnp.float32) * 0.05
        )
    return params


def _reference(x):
    # Pure-JAX reference of the exact PyTorch forward semantics (NCHW).
    x = jnp.maximum(x, 0.0)
    m = jnp.maximum(x[:, :, :, :-1], x[:, :, :, 1:])
    return jnp.maximum(m[:, :, :-1, :], m[:, :, 1:, :])


if __name__ == "__main__":
    key = jax.random.PRNGKey(0)
    k_x, k_p = jax.random.split(key)

    N, C, H, W = 2, 4, 16, 16
    x = jax.random.normal(k_x, (N, C, H, W), jnp.float32)

    _ = init_params(k_p, C)  # created for parity with __init__, unused in forward

    # Force the Pallas path so the kernel itself is exercised at the toy size.
    y = block_type1_forward(x, force_pallas=True)
    y = jax.block_until_ready(y)

    y_ref = _reference(x)
    assert y.shape == (N, C, H - 1, W - 1), y.shape
    assert jnp.allclose(y, y_ref, atol=1e-6), "pallas path mismatch vs reference"

    # The default (small-input fast-path) entry must agree too.
    y_fast = jax.block_until_ready(block_type1_forward(x))
    assert jnp.allclose(y_fast, y_ref, atol=1e-6), "fast path mismatch vs reference"

    print("KERNEL_OK")
</pallas_src>

<mosaic_0001>
module attributes {stable_mosaic.version = 11 : i64} {
  func.func @_block_type1_kernel(%arg0: i32, %arg1: i32, %arg2: memref<1x16x16x4xf32, #tpu.memory_space<vmem>>, %arg3: memref<1x15x15x4xf32, #tpu.memory_space<vmem>>) attributes {dimension_semantics = [#tpu.dimension_semantics<parallel>, #tpu.dimension_semantics<parallel>], iteration_bounds = array<i64: 2, 1>, scalar_prefetch = 0 : i64, scratch_operands = 0 : i64, tpu.core_type = #tpu.core_type<tc>, window_params = [{transform_indices = @transform_0, window_bounds = array<i64: 1, 16, 16, 4>}, {transform_indices = @transform_1, window_bounds = array<i64: 1, 15, 15, 4>}]} {
    %c0 = arith.constant 0 : index
    %c0_0 = arith.constant 0 : index
    %c0_1 = arith.constant 0 : index
    %c0_2 = arith.constant 0 : index
    %0 = vector.load %arg2[%c0, %c0_0, %c0_1, %c0_2] : memref<1x16x16x4xf32, #tpu.memory_space<vmem>>, vector<1x16x16x4xf32>
    %cst = arith.constant 0.000000e+00 : f32
    %1 = vector.broadcast %cst : f32 to vector<1x16x16x4xf32>
    %2 = arith.maximumf %0, %1 : vector<1x16x16x4xf32>
    %3 = vector.extract_strided_slice %2 {offsets = [0, 0, 0, 0], sizes = [1, 16, 15, 4], strides = [1, 1, 1, 1]} : vector<1x16x16x4xf32> to vector<1x16x15x4xf32>
    %4 = vector.extract_strided_slice %2 {offsets = [0, 0, 1, 0], sizes = [1, 16, 15, 4], strides = [1, 1, 1, 1]} : vector<1x16x16x4xf32> to vector<1x16x15x4xf32>
    %5 = arith.maximumf %3, %4 : vector<1x16x15x4xf32>
    %6 = vector.extract_strided_slice %5 {offsets = [0, 0, 0, 0], sizes = [1, 15, 15, 4], strides = [1, 1, 1, 1]} : vector<1x16x15x4xf32> to vector<1x15x15x4xf32>
    %7 = vector.extract_strided_slice %5 {offsets = [0, 1, 0, 0], sizes = [1, 15, 15, 4], strides = [1, 1, 1, 1]} : vector<1x16x15x4xf32> to vector<1x15x15x4xf32>
    %8 = arith.maximumf %6, %7 : vector<1x15x15x4xf32>
    %c0_3 = arith.constant 0 : index
    %c0_4 = arith.constant 0 : index
    %c0_5 = arith.constant 0 : index
    %c0_6 = arith.constant 0 : index
    %9 = vector.load %arg3[%c0_3, %c0_4, %c0_5, %c0_6] : memref<1x15x15x4xf32, #tpu.memory_space<vmem>>, vector<1x15x15x4xf32>
    tpu.vector_store %arg3[%c0_3, %c0_4, %c0_5, %c0_6], %8 {strides = array<i32>} : memref<1x15x15x4xf32, #tpu.memory_space<vmem>>, vector<1x15x15x4xf32>,
    return
  }
  func.func @transform_0(%arg0: i32, %arg1: i32) -> (i32, i32, i32, i32) {
    %c0_i32 = arith.constant 0 : i32
    %c0_i32_0 = arith.constant 0 : i32
    %c0_i32_1 = arith.constant 0 : i32
    return %arg0, %c0_i32, %c0_i32_0, %arg1 : i32, i32, i32, i32
  }
  func.func @transform_1(%arg0: i32, %arg1: i32) -> (i32, i32, i32, i32) {
    %c0_i32 = arith.constant 0 : i32
    %c0_i32_0 = arith.constant 0 : i32
    %c0_i32_1 = arith.constant 0 : i32
    return %arg0, %c0_i32, %c0_i32_0, %arg1 : i32, i32, i32, i32
  }
}

</mosaic_0001>

<bundles_post_ra>
// kernel: tpu_custom_call.1
= control target key start
LH: loop header
LB: loop body
LE: loop exit
PB: predicated region body
PF: predicated region fallthrough
CT: control target
= control target key end

     0   :  { %s572_s6 = smov 0   ;;  %s574_s7 = smov 0   ;;  %s721_s0 = inlined_call_operand.vmem [shape: f32[2,16,16,4], index: 0, kind: input, shape index: {}]   ;;  %s722_s1 = inlined_call_operand.vmem [shape: f32[2,15,15,4], index: 1, kind: output, shape index: {}]  }
   0x1   :  { %s576_s8 = smov 0  }
   0x2 LB: > { %s23_s9 = sadd.s32 1, %s556_s7  ;;  %p506_p0 = scmp.ge.s32.totalorder %s560_s8, 1  ;;  %s560_s8 = sphi %s576_s8, %s11_s8   ;;  %s556_s7 = sphi %s574_s7, %s724_s7   ;;  %s552_s6 = sphi %s572_s6, %s723_s6  }
   0x3   : > { %p25_p1 = scmp.ge.s32.totalorder %s23_s9, 2  ;;  %p106_p2 = scmp.lt.s32.totalorder %s560_s8, 3 }
   0x5   : > { %s726_s9 = smov (%p25_p1, %s23_s9), 0  ;;  %p107_p3 = pnand %p506_p0, %p106_p2 }
   0x6   : > { %p132_p4 = scmp.lt.s32.totalorder (!%p107_p3), %s552_s6, 1 }
   0x7   : > { %110 = sbr.rel (%p107_p3) target bundleno = 58 (0x3a), region = 24 }
   0xc   : > { %s728_s6 = smov (!%p132_p4, %s552_s6), 1  ;;  %vm244_vm0 = vcmask 1046528   ;;  %vm387_vm1 = vcmask 31744   ;;  %vm389_vm2 = vcmask 30720  }
   0xd   : > { %s512_s10 = sshll.u32 %s728_s6, 8  ;;  %s513_s14 = smul.u32 240, %s728_s6 }
   0xe   : > { %s596_s13 = scalar_lea.vmem %s721_s0, %s512_s10 }
   0xf   : > { %v148_v0 = vld [vmem:[%s596_s13] sm:$0xff]  ;;  %v149_v1 = vld [vmem:[%s596_s13 + $0x8] sm:$0xff]  ;;  %v150_v2 = vld [vmem:[%s596_s13 + $0x10] sm:$0xff]  ;;  %s616_s17 = scalar_lea.vmem %s722_s1, %s513_s14 }
  0x10   : > { %v151_v3 = vld [vmem:[%s596_s13 + $0x18] sm:$0xff]  ;;  %v180_v4 = vmax.f32 %v148_v0, 0.0  ;;  %v181_v5 = vmax.f32 %v149_v1, 0.0  ;;  %v182_v6 = vmax.f32 %v150_v2, 0.0  ;;  %v152_v7 = vld [vmem:[%s596_s13 + $0x20] sm:$0xff]  ;;  %v153_v8 = vld [vmem:[%s596_s13 + $0x28] sm:$0xff] }
  0x11   : > { %v183_v9 = vmax.f32 %v151_v3, 0.0  ;;  %v184_v10 = vmax.f32 %v152_v7, 0.0  ;;  %v185_v11 = vmax.f32 %v153_v8, 0.0  ;;  %v154_v12 = vld [vmem:[%s596_s13 + $0x30] sm:$0xff]  ;;  %v155_v13 = vld [vmem:[%s596_s13 + $0x38] sm:$0xff]  ;;  %v156_v14 = vld [vmem:[%s596_s13 + $0x40] sm:$0xff] }
  0x12   : > { %v245_v15 = vrot.slane %v180_v4, 1  ;;  %v246_v16 = vrot.slane %v181_v5, 1  ;;  %v248_v17 = vrot.slane %v182_v6, 1  ;;  %v186_v18 = vmax.f32 %v154_v12, 0.0  ;;  %v157_v26 = vld [vmem:[%s596_s13 + $0x48] sm:$0xff]  ;;  %v158_v28 = vld [vmem:[%s596_s13 + $0x50] sm:$0xff] }
  0x13   : > { %v249_v19 = vrot.slane %v183_v9, 1  ;;  %v251_v20 = vrot.slane %v184_v10, 1  ;;  %v252_v21 = vrot.slane %v185_v11, 1  ;;  %v187_v22 = vmax.f32 %v155_v13, 0.0  ;;  %v159_v37 = vld [vmem:[%s596_s13 + $0x58] sm:$0xff]  ;;  %v160_v42 = vld [vmem:[%s596_s13 + $0x60] sm:$0xff] }
  0x14   : > { %v247_v23 = vsel %vm244_vm0, %v245_v15, %v246_v16  ;;  %v326_v24 = vmax.f32 %v181_v5, %v246_v16  ;;  %v254_v25 = vrot.slane %v186_v18, 1  ;;  %v188_v27 = vmax.f32 %v156_v14, 0.0  ;;  %v161_v43 = vld [vmem:[%s596_s13 + $0x68] sm:$0xff]  ;;  %v162_v44 = vld [vmem:[%s596_s13 + $0x70] sm:$0xff]  ;;  %v163_v56 = vld [vmem:[%s596_s13 + $0x78] sm:$0xff] }
  0x15   : > { %v250_v29 = vsel %vm244_vm0, %v248_v17, %v249_v19  ;;  %v325_v30 = vmax.f32 %v180_v4, %v247_v23  ;;  %v328_v31 = vmax.f32 %v183_v9, %v249_v19  ;;  %v253_v32 = vsel %vm244_vm0, %v251_v20, %v252_v21  ;;  %v164_v58 = vld [vmem:[%s596_s13 + $0x80] sm:$0xff]  ;;  %v166_v8 = vld [vmem:[%s596_s13 + $0x90] sm:$0xff]  ;;  %v167_v17 = vld [vmem:[%s596_s13 + $0x98] sm:$0xff] }
  0x16   : > { %v327_v33 = vmax.f32 %v182_v6, %v250_v29  ;;  %v329_v34 = vmax.f32 %v184_v10, %v253_v32  ;;  %v330_v35 = vmax.f32 %v185_v11, %v252_v21  ;;  %v255_v36 = vrot.slane %v187_v22, 1  ;;  %v165_v6 = vld [vmem:[%s596_s13 + $0x88] sm:$0xff] }
  0x17   : > { %v358_v38 = vmax.f32 %v326_v24, %v328_v31  ;;  %v189_v39 = vmax.f32 %v157_v26, 0.0  ;;  %v257_v40 = vrot.slane %v188_v27, 1  ;;  %v190_v41 = vmax.f32 %v158_v28, 0.0  ;;  %v169_v23 = vld [vmem:[%s596_s13 + $0xa8] sm:$0xff]  ;;  %v170_v24 = vld [vmem:[%s596_s13 + $0xb0] sm:$0xff] }
  0x18   : > { %v357_v45 = vmax.f32 %v325_v30, %v327_v33  ;;  %v359_v46 = vmax.f32 %v327_v33, %v329_v34  ;;  %v360_v47 = vmax.f32 %v328_v31, %v330_v35  ;;  %v256_v48 = vsel %vm244_vm0, %v254_v25, %v255_v36 }
  0x19   : > { %390 = vst.msk [vmem:[%s616_s17 + $0x8] sm:$0x7f] %vm389_vm2, %v358_v38  ;;  %v331_v49 = vmax.f32 %v186_v18, %v256_v48  ;;  %v332_v50 = vmax.f32 %v187_v22, %v255_v36  ;;  %v258_v51 = vrot.slane %v189_v39, 1  ;;  %v191_v52 = vmax.f32 %v159_v37, 0.0  ;;  %v168_v22 = vld [vmem:[%s596_s13 + $0xa0] sm:$0xff]  ;;  %v171_v36 = vld [vmem:[%s596_s13 + $0xb8] sm:$0xff] }
  0x1a   : > { %388 = vst.msk [vmem:[%s616_s17] sm:$0xff] %vm387_vm1, %v357_v45  ;;  %391 = vst.msk [vmem:[%s616_s17 + $0x10] sm:$0xff] %vm387_vm1, %v359_v46  ;;  %v260_v53 = vrot.slane %v190_v41, 1  ;;  %v192_v54 = vmax.f32 %v160_v42, 0.0  ;;  %v193_v55 = vmax.f32 %v161_v43, 0.0  ;;  %v194_v57 = vmax.f32 %v162_v44, 0.0 }
  0x1b   : > { %392 = vst.msk [vmem:[%s616_s17 + $0x18] sm:$0x7f] %vm389_vm2, %v360_v47  ;;  %v361_v59 = vmax.f32 %v329_v34, %v331_v49  ;;  %v362_v60 = vmax.f32 %v330_v35, %v332_v50  ;;  %v259_v61 = vsel %vm244_vm0, %v257_v40, %v258_v51  ;;  %v334_v62 = vmax.f32 %v189_v39, %v258_v51  ;;  %v172_v38 = vld [vmem:[%s596_s13 + $0xc0] sm:$0xff] }
  0x1c   : > { %v333_v63 = vmax.f32 %v188_v27, %v259_v61  ;;  %v261_v0 = vrot.slane %v191_v52, 1  ;;  %v263_v1 = vrot.slane %v192_v54, 1  ;;  %v264_v2 = vrot.slane %v193_v55, 1  ;;  %v175_v61 = vld [vmem:[%s596_s13 + $0xd8] sm:$0xff] }
  0x1d   : > { %393 = vst.msk [vmem:[%s616_s17 + $0x20] sm:$0xff] %vm387_vm1, %v361_v59  ;;  %v364_v3 = vmax.f32 %v332_v50, %v334_v62  ;;  %v195_v4 = vmax.f32 %v163_v56, 0.0  ;;  %v266_v5 = vrot.slane %v194_v57, 1  ;;  %v196_v7 = vmax.f32 %v164_v58, 0.0  ;;  %v173_v50 = vld [vmem:[%s596_s13 + $0xc8] sm:$0xff] }
  0x1e   : > { %394 = vst.msk [vmem:[%s616_s17 + $0x28] sm:$0x7f] %vm389_vm2, %v362_v60  ;;  %v363_v9 = vmax.f32 %v331_v49, %v333_v63  ;;  %v262_v10 = vsel %vm244_vm0, %v260_v53, %v261_v0  ;;  %v336_v11 = vmax.f32 %v191_v52, %v261_v0  ;;  %v265_v12 = vsel %vm244_vm0, %v263_v1, %v264_v2  ;;  %v174_v52 = vld [vmem:[%s596_s13 + $0xd0] sm:$0xff] }
  0x1f   : > { %396 = vst.msk [vmem:[%s616_s17 + $0x38] sm:$0x7f] %vm389_vm2, %v364_v3  ;;  %v335_v13 = vmax.f32 %v190_v41, %v262_v10  ;;  %v337_v14 = vmax.f32 %v192_v54, %v265_v12  ;;  %v338_v15 = vmax.f32 %v193_v55, %v264_v2  ;;  %v267_v16 = vrot.slane %v195_v4, 1  ;;  %v176_v2 = vld [vmem:[%s596_s13 + $0xe0] sm:$0xff]  ;;  %v177_v3 = vld [vmem:[%s596_s13 + $0xe8] sm:$0xff] }
  0x20   : > { %395 = vst.msk [vmem:[%s616_s17 + $0x30] sm:$0xff] %vm387_vm1, %v363_v9  ;;  %v366_v18 = vmax.f32 %v334_v62, %v336_v11  ;;  %v197_v19 = vmax.f32 %v165_v6, 0.0  ;;  %v269_v20 = vrot.slane %v196_v7, 1  ;;  %v198_v21 = vmax.f32 %v166_v8, 0.0 }
  0x21   : > { %v365_v25 = vmax.f32 %v333_v63, %v335_v13  ;;  %v367_v26 = vmax.f32 %v335_v13, %v337_v14  ;;  %v368_v27 = vmax.f32 %v336_v11, %v338_v15  ;;  %v268_v28 = vsel %vm244_vm0, %v266_v5, %v267_v16 }
  0x22   : > { %398 = vst.msk [vmem:[%s616_s17 + $0x48] sm:$0x7f] %vm389_vm2, %v366_v18  ;;  %v339_v29 = vmax.f32 %v194_v57, %v268_v28  ;;  %v340_v30 = vmax.f32 %v195_v4, %v267_v16  ;;  %v270_v31 = vrot.slane %v197_v19, 1  ;;  %v199_v32 = vmax.f32 %v167_v17, 0.0  ;;  %v178_v4 = vld [vmem:[%s596_s13 + $0xf0] sm:$0xff]  ;;  %v179_v16 = vld [vmem:[%s596_s13 + $0xf8] sm:$0xff] }
  0x23   : > { %397 = vst.msk [vmem:[%s616_s17 + $0x40] sm:$0xff] %vm387_vm1, %v365_v25  ;;  %399 = vst.msk [vmem:[%s616_s17 + $0x50] sm:$0xff] %vm387_vm1, %v367_v26  ;;  %v272_v33 = vrot.slane %v198_v21, 1  ;;  %v200_v34 = vmax.f32 %v168_v22, 0.0  ;;  %v201_v35 = vmax.f32 %v169_v23, 0.0  ;;  %v202_v37 = vmax.f32 %v170_v24, 0.0 }
  0x24   : > { %400 = vst.msk [vmem:[%s616_s17 + $0x58] sm:$0x7f] %vm389_vm2, %v368_v27  ;;  %v369_v39 = vmax.f32 %v337_v14, %v339_v29  ;;  %v370_v40 = vmax.f32 %v338_v15, %v340_v30  ;;  %v271_v41 = vsel %vm244_vm0, %v269_v20, %v270_v31  ;;  %v342_v42 = vmax.f32 %v197_v19, %v270_v31 }
  0x25   : > { %v341_v43 = vmax.f32 %v196_v7, %v271_v41  ;;  %v273_v44 = vrot.slane %v199_v32, 1  ;;  %v275_v45 = vrot.slane %v200_v34, 1  ;;  %v276_v46 = vrot.slane %v201_v35, 1 }
  0x26   : > { %401 = vst.msk [vmem:[%s616_s17 + $0x60] sm:$0xff] %vm387_vm1, %v369_v39  ;;  %v372_v47 = vmax.f32 %v340_v30, %v342_v42  ;;  %v203_v48 = vmax.f32 %v171_v36, 0.0  ;;  %v278_v49 = vrot.slane %v202_v37, 1  ;;  %v204_v51 = vmax.f32 %v172_v38, 0.0 }
  0x27   : > { %402 = vst.msk [vmem:[%s616_s17 + $0x68] sm:$0x7f] %vm389_vm2, %v370_v40  ;;  %v371_v53 = vmax.f32 %v339_v29, %v341_v43  ;;  %v274_v54 = vsel %vm244_vm0, %v272_v33, %v273_v44  ;;  %v344_v55 = vmax.f32 %v199_v32, %v273_v44  ;;  %v277_v56 = vsel %vm244_vm0, %v275_v45, %v276_v46 }
  0x28   : > { %404 = vst.msk [vmem:[%s616_s17 + $0x78] sm:$0x7f] %vm389_vm2, %v372_v47  ;;  %v343_v57 = vmax.f32 %v198_v21, %v274_v54  ;;  %v345_v58 = vmax.f32 %v200_v34, %v277_v56  ;;  %v346_v59 = vmax.f32 %v201_v35, %v276_v46  ;;  %v279_v60 = vrot.slane %v203_v48, 1 }
  0x29   : > { %403 = vst.msk [vmem:[%s616_s17 + $0x70] sm:$0xff] %vm387_vm1, %v371_v53  ;;  %v374_v62 = vmax.f32 %v342_v42, %v344_v55  ;;  %v205_v63 = vmax.f32 %v173_v50, 0.0  ;;  %v281_v0 = vrot.slane %v204_v51, 1  ;;  %v206_v1 = vmax.f32 %v174_v52, 0.0 }
  0x2a   : > { %v373_v5 = vmax.f32 %v341_v43, %v343_v57  ;;  %v375_v6 = vmax.f32 %v343_v57, %v345_v58  ;;  %v376_v7 = vmax.f32 %v344_v55, %v346_v59  ;;  %v280_v8 = vsel %vm244_vm0, %v278_v49, %v279_v60 }
  0x2b   : > { %406 = vst.msk [vmem:[%s616_s17 + $0x88] sm:$0x7f] %vm389_vm2, %v374_v62  ;;  %v347_v9 = vmax.f32 %v202_v37, %v280_v8  ;;  %v348_v10 = vmax.f32 %v203_v48, %v279_v60  ;;  %v282_v11 = vrot.slane %v205_v63, 1  ;;  %v207_v12 = vmax.f32 %v175_v61, 0.0 }
  0x2c   : > { %405 = vst.msk [vmem:[%s616_s17 + $0x80] sm:$0xff] %vm387_vm1, %v373_v5  ;;  %407 = vst.msk [vmem:[%s616_s17 + $0x90] sm:$0xff] %vm387_vm1, %v375_v6  ;;  %v284_v13 = vrot.slane %v206_v1, 1  ;;  %v208_v14 = vmax.f32 %v176_v2, 0.0  ;;  %v209_v15 = vmax.f32 %v177_v3, 0.0  ;;  %v210_v17 = vmax.f32 %v178_v4, 0.0 }
  0x2d   : > { %408 = vst.msk [vmem:[%s616_s17 + $0x98] sm:$0x7f] %vm389_vm2, %v376_v7  ;;  %v377_v18 = vmax.f32 %v345_v58, %v347_v9  ;;  %v378_v19 = vmax.f32 %v346_v59, %v348_v10  ;;  %v283_v20 = vsel %vm244_vm0, %v281_v0, %v282_v11  ;;  %v350_v21 = vmax.f32 %v205_v63, %v282_v11 }
  0x2e   : > { %v349_v22 = vmax.f32 %v204_v51, %v283_v20  ;;  %v285_v23 = vrot.slane %v207_v12, 1  ;;  %v287_v24 = vrot.slane %v208_v14, 1  ;;  %v288_v25 = vrot.slane %v209_v15, 1 }
  0x2f   : > { %409 = vst.msk [vmem:[%s616_s17 + $0xa0] sm:$0xff] %vm387_vm1, %v377_v18  ;;  %v380_v26 = vmax.f32 %v348_v10, %v350_v21  ;;  %v211_v27 = vmax.f32 %v179_v16, 0.0  ;;  %v290_v28 = vrot.slane %v210_v17, 1 }
  0x30   : > { %410 = vst.msk [vmem:[%s616_s17 + $0xa8] sm:$0x7f] %vm389_vm2, %v378_v19  ;;  %v379_v29 = vmax.f32 %v347_v9, %v349_v22  ;;  %v286_v30 = vsel %vm244_vm0, %v284_v13, %v285_v23  ;;  %v352_v31 = vmax.f32 %v207_v12, %v285_v23  ;;  %v289_v32 = vsel %vm244_vm0, %v287_v24, %v288_v25 }
  0x31   : > { %412 = vst.msk [vmem:[%s616_s17 + $0xb8] sm:$0x7f] %vm389_vm2, %v380_v26  ;;  %v351_v33 = vmax.f32 %v206_v1, %v286_v30  ;;  %v353_v34 = vmax.f32 %v208_v14, %v289_v32  ;;  %v354_v35 = vmax.f32 %v209_v15, %v288_v25  ;;  %v291_v36 = vrot.slane %v211_v27, 1 }
  0x32   : > { %411 = vst.msk [vmem:[%s616_s17 + $0xb0] sm:$0xff] %vm387_vm1, %v379_v29  ;;  %v382_v37 = vmax.f32 %v350_v21, %v352_v31 }
  0x33   : > { %v381_v38 = vmax.f32 %v349_v22, %v351_v33  ;;  %v383_v39 = vmax.f32 %v351_v33, %v353_v34  ;;  %v384_v40 = vmax.f32 %v352_v31, %v354_v35  ;;  %v292_v41 = vsel %vm244_vm0, %v290_v28, %v291_v36 }
  0x34   : > { %414 = vst.msk [vmem:[%s616_s17 + $0xc8] sm:$0x7f] %vm389_vm2, %v382_v37  ;;  %v355_v42 = vmax.f32 %v210_v17, %v292_v41  ;;  %v356_v43 = vmax.f32 %v211_v27, %v291_v36 }
  0x35   : > { %413 = vst.msk [vmem:[%s616_s17 + $0xc0] sm:$0xff] %vm387_vm1, %v381_v38  ;;  %415 = vst.msk [vmem:[%s616_s17 + $0xd0] sm:$0xff] %vm387_vm1, %v383_v39 }
  0x36   : > { %416 = vst.msk [vmem:[%s616_s17 + $0xd8] sm:$0x7f] %vm389_vm2, %v384_v40  ;;  %v385_v44 = vmax.f32 %v353_v34, %v355_v42  ;;  %v386_v45 = vmax.f32 %v354_v35, %v356_v43 }
  0x38   : > { %417 = vst.msk [vmem:[%s616_s17 + $0xe0] sm:$0xff] %vm387_vm1, %v385_v44 }
  0x39   : > { %418 = vst.msk [vmem:[%s616_s17 + $0xe8] sm:$0x7f] %vm389_vm2, %v386_v45 }
  0x3a PF: > { %s11_s8 = sadd.s32 1, %s560_s8   ;;  %s723_s6 = smov %s556_s7 }
  0x3b   : > { %p8_p5 = scmp.ge.s32.totalorder %s11_s8, 4   ;;  %s724_s7 = smov %s726_s9 }
  0x3d   :  { %10 = sbr.rel (!%p8_p5) target bundleno = 2 (0x2), region = 54 }

</bundles_post_ra>
